<compile_context>
chip_gen: v7x
topology: tpu7x:2x2x1
jax: 0.10.0
libtpu: 0.0.40
codegen_flags: <defaults>
</compile_context>

<pallas_src>
import jax
import jax.numpy as jnp
from jax.experimental import pallas as pl
from jax.experimental.pallas import tpu as pltpu

LAYER_SIZE = 8      # module default: layer_size=8  (must be >= 3 for this kernel)
OUTPUT_DIM = 3      # module default: output_dim=3


def cheb_fcn_kernel(w_ref, b_ref, t_ref, o_ref):
    # w_ref : SMEM (OUT*L,)  -- torch nn.Linear weight (OUT, L), row-major flat
    # b_ref : SMEM (OUT,)
    # t_ref : VMEM (TILE_S, 128)       -- batch rows packed sublane x lane
    # o_ref : VMEM (OUT, TILE_S, 128)  -- lane-dense output
    t = t_ref[...]                                   # (TILE_S, 128)
    two_t = t + t                                    # hoisted, reused each step

    # Fused Chebyshev recurrence + Linear (all VPU broadcast-FMAs, no MXU):
    #   acc[o] = b[o] + sum_k w[o,k] * T_k(t)
    # T_0 == 1 and T_1 == t are folded into the accumulator init so no feature
    # tile is ever materialized past its single use.
    accs = []
    for o in range(OUTPUT_DIM):
        base = o * LAYER_SIZE
        accs.append(w_ref[base + 1] * t + (b_ref[o] + w_ref[base]))

    # T_2 = 2*t*t - 1  (scalar subtract: avoids a ones_like tile).
    t_p = t
    t_c = two_t * t - 1.0
    for o in range(OUTPUT_DIM):
        accs[o] = accs[o] + w_ref[o * LAYER_SIZE + 2] * t_c
    t_pp, t_p = t_p, t_c

    # T_k = 2*t*T_{k-1} - T_{k-2}, accumulated immediately into each output.
    for k in range(3, LAYER_SIZE):
        t_c = two_t * t_p - t_pp
        for o in range(OUTPUT_DIM):
            accs[o] = accs[o] + w_ref[o * LAYER_SIZE + k] * t_c
        t_pp, t_p = t_p, t_c

    for o in range(OUTPUT_DIM):
        o_ref[o, :, :] = accs[o].astype(o_ref.dtype)  # lane-dense full-width vst


def _round_up(a, m):
    return -(-a // m) * m


def cheb_fcn1d_forward(x, weight, bias, *, max_tile_sublanes=2048,
                       out_dtype=jnp.float32, torch_layout=True):
    """x: (N, D) f32, weight: (OUT, L) f32 (torch layout), bias: (OUT,) f32.

    Returns (N, OUT) f32 (torch layout) by default, matching ChebFCN1D.forward.
    Pass torch_layout=False to get (OUT, N) and skip the epilogue transpose.
    """
    n = x.shape[0]
    t = x[:, 0].astype(jnp.float32)                  # only column 0 is used

    # Pack batch rows onto (sublane, lane).
    n_sub = _round_up(pl.cdiv(n, 128), 8)            # sublane rows, multiple of 8
    tile_s = min(max_tile_sublanes, n_sub)
    # v7x has 2 TensorCores: make sure the grid has >= 2 steps when there is
    # enough work so dimension_semantics=("parallel",) can shard it across both.
    if n_sub > 8:
        half = _round_up(pl.cdiv(n_sub, 2), 8)
        tile_s = min(tile_s, half)
    n_sub_pad = _round_up(n_sub, tile_s)
    n_pad = n_sub_pad * 128

    # Single pad pass (no zeros-init + dynamic-update-slice double pass).
    t_pad = jnp.pad(t, (0, n_pad - n)).reshape(n_sub_pad, 128)

    grid = (n_sub_pad // tile_s,)

    out = pl.pallas_call(
        cheb_fcn_kernel,
        out_shape=jax.ShapeDtypeStruct((OUTPUT_DIM, n_sub_pad, 128), out_dtype),
        grid_spec=pltpu.PrefetchScalarGridSpec(
            num_scalar_prefetch=0,
            grid=grid,
            in_specs=[
                # Tiny weight/bias: resident in SMEM, loaded once (not per step).
                pl.BlockSpec(memory_space=pltpu.MemorySpace.SMEM),
                pl.BlockSpec(memory_space=pltpu.MemorySpace.SMEM),
                # Batch tile: double-buffered pipeline over the grid.
                pl.BlockSpec((tile_s, 128), lambda i: (i, 0)),
            ],
            out_specs=pl.BlockSpec(
                (OUTPUT_DIM, tile_s, 128), lambda i: (0, i, 0)
            ),
        ),
        compiler_params=pltpu.CompilerParams(
            dimension_semantics=("parallel",),       # shard grid over v7x's 2 TCs
            vmem_limit_bytes=32 * 1024 * 1024,       # 2048-sublane tiles fit v5e too
        ),
    )(weight.astype(jnp.float32).reshape(-1), bias.astype(jnp.float32), t_pad)

    out = out.reshape(OUTPUT_DIM, n_pad)[:, :n]      # (OUT, N), padding dropped
    if torch_layout:
        # Matches PyTorch's (N, OUT).  For large N this XLA transpose costs more
        # HBM bytes than the kernel; use torch_layout=False and fuse the
        # transpose into the consumer when possible.
        return out.T
    return out


def cheb_fcn1d_reference(x, weight, bias):
    """Pure-JAX reference mirroring the PyTorch forward exactly."""
    t = x[:, 0][:, None]
    x_pp = jnp.ones_like(t)
    x_p = jnp.ones_like(t) * t
    X = jnp.concatenate((x_pp, x_p), axis=1)
    for _ in range(2, LAYER_SIZE):
        xc = 2.0 * t * x_p - x_pp
        X = jnp.concatenate((X, xc), axis=1)
        x_pp = x_p
        x_p = xc
    return X @ weight.T + bias


if __name__ == "__main__":
    key = jax.random.PRNGKey(0)
    kx, kw, kb = jax.random.split(key, 3)

    # Small deterministic inputs / params (synthetic, not a checkpoint load).
    N, D = 16, 4
    x = jax.random.normal(kx, (N, D), dtype=jnp.float32)
    # nn.Linear(layer_size, output_dim): weight (OUT, L), bias (OUT,)
    bound = 1.0 / (LAYER_SIZE ** 0.5)
    weight = jax.random.uniform(
        kw, (OUTPUT_DIM, LAYER_SIZE), minval=-bound, maxval=bound, dtype=jnp.float32
    )
    bias = jax.random.uniform(
        kb, (OUTPUT_DIM,), minval=-bound, maxval=bound, dtype=jnp.float32
    )

    out = cheb_fcn1d_forward(x, weight, bias)
    out = jax.block_until_ready(out)

    ref = cheb_fcn1d_reference(x, weight, bias)
    assert out.shape == (N, OUTPUT_DIM)
    assert jnp.allclose(out, ref, atol=1e-5, rtol=1e-5), "mismatch vs reference"

    print("KERNEL_OK")
</pallas_src>

<mosaic_0001>
module attributes {stable_mosaic.version = 11 : i64} {
  func.func @cheb_fcn_kernel(%arg0: i32, %arg1: memref<24xf32, #tpu.memory_space<smem>>, %arg2: memref<3xf32, #tpu.memory_space<smem>>, %arg3: memref<8x128xf32, #tpu.memory_space<vmem>>, %arg4: memref<3x8x128xf32, #tpu.memory_space<vmem>>) attributes {dimension_semantics = [#tpu.dimension_semantics<parallel>], iteration_bounds = array<i64: 1>, scalar_prefetch = 0 : i64, scratch_operands = 0 : i64, tpu.core_type = #tpu.core_type<tc>, window_params = [{transform_indices = @transform_0, window_bounds = array<i64: 24>}, {transform_indices = @transform_1, window_bounds = array<i64: 3>}, {transform_indices = @transform_2, window_bounds = array<i64: 8, 128>}, {transform_indices = @transform_3, window_bounds = array<i64: 3, 8, 128>}]} {
    %c0 = arith.constant 0 : index
    %c0_0 = arith.constant 0 : index
    %0 = vector.load %arg3[%c0, %c0_0] : memref<8x128xf32, #tpu.memory_space<vmem>>, vector<8x128xf32>
    %1 = arith.addf %0, %0 : vector<8x128xf32>
    %c1 = arith.constant 1 : index
    %2 = memref.load %arg1[%c1] : memref<24xf32, #tpu.memory_space<smem>>
    %3 = vector.broadcast %2 : f32 to vector<8x128xf32>
    %4 = arith.mulf %3, %0 : vector<8x128xf32>
    %c0_1 = arith.constant 0 : index
    %5 = memref.load %arg2[%c0_1] : memref<3xf32, #tpu.memory_space<smem>>
    %c0_2 = arith.constant 0 : index
    %6 = memref.load %arg1[%c0_2] : memref<24xf32, #tpu.memory_space<smem>>
    %7 = arith.addf %5, %6 : f32
    %8 = vector.broadcast %7 : f32 to vector<8x128xf32>
    %9 = arith.addf %4, %8 : vector<8x128xf32>
    %c9 = arith.constant 9 : index
    %10 = memref.load %arg1[%c9] : memref<24xf32, #tpu.memory_space<smem>>
    %11 = vector.broadcast %10 : f32 to vector<8x128xf32>
    %12 = arith.mulf %11, %0 : vector<8x128xf32>
    %c1_3 = arith.constant 1 : index
    %13 = memref.load %arg2[%c1_3] : memref<3xf32, #tpu.memory_space<smem>>
    %c8 = arith.constant 8 : index
    %14 = memref.load %arg1[%c8] : memref<24xf32, #tpu.memory_space<smem>>
    %15 = arith.addf %13, %14 : f32
    %16 = vector.broadcast %15 : f32 to vector<8x128xf32>
    %17 = arith.addf %12, %16 : vector<8x128xf32>
    %c17 = arith.constant 17 : index
    %18 = memref.load %arg1[%c17] : memref<24xf32, #tpu.memory_space<smem>>
    %19 = vector.broadcast %18 : f32 to vector<8x128xf32>
    %20 = arith.mulf %19, %0 : vector<8x128xf32>
    %c2 = arith.constant 2 : index
    %21 = memref.load %arg2[%c2] : memref<3xf32, #tpu.memory_space<smem>>
    %c16 = arith.constant 16 : index
    %22 = memref.load %arg1[%c16] : memref<24xf32, #tpu.memory_space<smem>>
    %23 = arith.addf %21, %22 : f32
    %24 = vector.broadcast %23 : f32 to vector<8x128xf32>
    %25 = arith.addf %20, %24 : vector<8x128xf32>
    %26 = arith.mulf %1, %0 : vector<8x128xf32>
    %cst = arith.constant 1.000000e+00 : f32
    %27 = vector.broadcast %cst : f32 to vector<8x128xf32>
    %28 = arith.subf %26, %27 : vector<8x128xf32>
    %c2_4 = arith.constant 2 : index
    %29 = memref.load %arg1[%c2_4] : memref<24xf32, #tpu.memory_space<smem>>
    %30 = vector.broadcast %29 : f32 to vector<8x128xf32>
    %31 = arith.mulf %30, %28 : vector<8x128xf32>
    %32 = arith.addf %9, %31 : vector<8x128xf32>
    %c10 = arith.constant 10 : index
    %33 = memref.load %arg1[%c10] : memref<24xf32, #tpu.memory_space<smem>>
    %34 = vector.broadcast %33 : f32 to vector<8x128xf32>
    %35 = arith.mulf %34, %28 : vector<8x128xf32>
    %36 = arith.addf %17, %35 : vector<8x128xf32>
    %c18 = arith.constant 18 : index
    %37 = memref.load %arg1[%c18] : memref<24xf32, #tpu.memory_space<smem>>
    %38 = vector.broadcast %37 : f32 to vector<8x128xf32>
    %39 = arith.mulf %38, %28 : vector<8x128xf32>
    %40 = arith.addf %25, %39 : vector<8x128xf32>
    %41 = arith.mulf %1, %28 : vector<8x128xf32>
    %42 = arith.subf %41, %0 : vector<8x128xf32>
    %c3 = arith.constant 3 : index
    %43 = memref.load %arg1[%c3] : memref<24xf32, #tpu.memory_space<smem>>
    %44 = vector.broadcast %43 : f32 to vector<8x128xf32>
    %45 = arith.mulf %44, %42 : vector<8x128xf32>
    %46 = arith.addf %32, %45 : vector<8x128xf32>
    %c11 = arith.constant 11 : index
    %47 = memref.load %arg1[%c11] : memref<24xf32, #tpu.memory_space<smem>>
    %48 = vector.broadcast %47 : f32 to vector<8x128xf32>
    %49 = arith.mulf %48, %42 : vector<8x128xf32>
    %50 = arith.addf %36, %49 : vector<8x128xf32>
    %c19 = arith.constant 19 : index
    %51 = memref.load %arg1[%c19] : memref<24xf32, #tpu.memory_space<smem>>
    %52 = vector.broadcast %51 : f32 to vector<8x128xf32>
    %53 = arith.mulf %52, %42 : vector<8x128xf32>
    %54 = arith.addf %40, %53 : vector<8x128xf32>
    %55 = arith.mulf %1, %42 : vector<8x128xf32>
    %56 = arith.subf %55, %28 : vector<8x128xf32>
    %c4 = arith.constant 4 : index
    %57 = memref.load %arg1[%c4] : memref<24xf32, #tpu.memory_space<smem>>
    %58 = vector.broadcast %57 : f32 to vector<8x128xf32>
    %59 = arith.mulf %58, %56 : vector<8x128xf32>
    %60 = arith.addf %46, %59 : vector<8x128xf32>
    %c12 = arith.constant 12 : index
    %61 = memref.load %arg1[%c12] : memref<24xf32, #tpu.memory_space<smem>>
    %62 = vector.broadcast %61 : f32 to vector<8x128xf32>
    %63 = arith.mulf %62, %56 : vector<8x128xf32>
    %64 = arith.addf %50, %63 : vector<8x128xf32>
    %c20 = arith.constant 20 : index
    %65 = memref.load %arg1[%c20] : memref<24xf32, #tpu.memory_space<smem>>
    %66 = vector.broadcast %65 : f32 to vector<8x128xf32>
    %67 = arith.mulf %66, %56 : vector<8x128xf32>
    %68 = arith.addf %54, %67 : vector<8x128xf32>
    %69 = arith.mulf %1, %56 : vector<8x128xf32>
    %70 = arith.subf %69, %42 : vector<8x128xf32>
    %c5 = arith.constant 5 : index
    %71 = memref.load %arg1[%c5] : memref<24xf32, #tpu.memory_space<smem>>
    %72 = vector.broadcast %71 : f32 to vector<8x128xf32>
    %73 = arith.mulf %72, %70 : vector<8x128xf32>
    %74 = arith.addf %60, %73 : vector<8x128xf32>
    %c13 = arith.constant 13 : index
    %75 = memref.load %arg1[%c13] : memref<24xf32, #tpu.memory_space<smem>>
    %76 = vector.broadcast %75 : f32 to vector<8x128xf32>
    %77 = arith.mulf %76, %70 : vector<8x128xf32>
    %78 = arith.addf %64, %77 : vector<8x128xf32>
    %c21 = arith.constant 21 : index
    %79 = memref.load %arg1[%c21] : memref<24xf32, #tpu.memory_space<smem>>
    %80 = vector.broadcast %79 : f32 to vector<8x128xf32>
    %81 = arith.mulf %80, %70 : vector<8x128xf32>
    %82 = arith.addf %68, %81 : vector<8x128xf32>
    %83 = arith.mulf %1, %70 : vector<8x128xf32>
    %84 = arith.subf %83, %56 : vector<8x128xf32>
    %c6 = arith.constant 6 : index
    %85 = memref.load %arg1[%c6] : memref<24xf32, #tpu.memory_space<smem>>
    %86 = vector.broadcast %85 : f32 to vector<8x128xf32>
    %87 = arith.mulf %86, %84 : vector<8x128xf32>
    %88 = arith.addf %74, %87 : vector<8x128xf32>
    %c14 = arith.constant 14 : index
    %89 = memref.load %arg1[%c14] : memref<24xf32, #tpu.memory_space<smem>>
    %90 = vector.broadcast %89 : f32 to vector<8x128xf32>
    %91 = arith.mulf %90, %84 : vector<8x128xf32>
    %92 = arith.addf %78, %91 : vector<8x128xf32>
    %c22 = arith.constant 22 : index
    %93 = memref.load %arg1[%c22] : memref<24xf32, #tpu.memory_space<smem>>
    %94 = vector.broadcast %93 : f32 to vector<8x128xf32>
    %95 = arith.mulf %94, %84 : vector<8x128xf32>
    %96 = arith.addf %82, %95 : vector<8x128xf32>
    %97 = arith.mulf %1, %84 : vector<8x128xf32>
    %98 = arith.subf %97, %70 : vector<8x128xf32>
    %c7 = arith.constant 7 : index
    %99 = memref.load %arg1[%c7] : memref<24xf32, #tpu.memory_space<smem>>
    %100 = vector.broadcast %99 : f32 to vector<8x128xf32>
    %101 = arith.mulf %100, %98 : vector<8x128xf32>
    %102 = arith.addf %88, %101 : vector<8x128xf32>
    %c15 = arith.constant 15 : index
    %103 = memref.load %arg1[%c15] : memref<24xf32, #tpu.memory_space<smem>>
    %104 = vector.broadcast %103 : f32 to vector<8x128xf32>
    %105 = arith.mulf %104, %98 : vector<8x128xf32>
    %106 = arith.addf %92, %105 : vector<8x128xf32>
    %c23 = arith.constant 23 : index
    %107 = memref.load %arg1[%c23] : memref<24xf32, #tpu.memory_space<smem>>
    %108 = vector.broadcast %107 : f32 to vector<8x128xf32>
    %109 = arith.mulf %108, %98 : vector<8x128xf32>
    %110 = arith.addf %96, %109 : vector<8x128xf32>
    %c0_5 = arith.constant 0 : index
    %c0_6 = arith.constant 0 : index
    %c0_7 = arith.constant 0 : index
    %111 = vector.load %arg4[%c0_5, %c0_6, %c0_7] : memref<3x8x128xf32, #tpu.memory_space<vmem>>, vector<1x8x128xf32>
    %112 = vector.shape_cast %111 : vector<1x8x128xf32> to vector<8x128xf32>
    %113 = vector.shape_cast %102 : vector<8x128xf32> to vector<1x8x128xf32>
    tpu.vector_store %arg4[%c0_5, %c0_6, %c0_7], %113 {strides = array<i32>} : memref<3x8x128xf32, #tpu.memory_space<vmem>>, vector<1x8x128xf32>,
    %c1_8 = arith.constant 1 : index
    %c0_9 = arith.constant 0 : index
    %c0_10 = arith.constant 0 : index
    %114 = vector.load %arg4[%c1_8, %c0_9, %c0_10] : memref<3x8x128xf32, #tpu.memory_space<vmem>>, vector<1x8x128xf32>
    %115 = vector.shape_cast %114 : vector<1x8x128xf32> to vector<8x128xf32>
    %116 = vector.shape_cast %106 : vector<8x128xf32> to vector<1x8x128xf32>
    tpu.vector_store %arg4[%c1_8, %c0_9, %c0_10], %116 {strides = array<i32>} : memref<3x8x128xf32, #tpu.memory_space<vmem>>, vector<1x8x128xf32>,
    %c2_11 = arith.constant 2 : index
    %c0_12 = arith.constant 0 : index
    %c0_13 = arith.constant 0 : index
    %117 = vector.load %arg4[%c2_11, %c0_12, %c0_13] : memref<3x8x128xf32, #tpu.memory_space<vmem>>, vector<1x8x128xf32>
    %118 = vector.shape_cast %117 : vector<1x8x128xf32> to vector<8x128xf32>
    %119 = vector.shape_cast %110 : vector<8x128xf32> to vector<1x8x128xf32>
    tpu.vector_store %arg4[%c2_11, %c0_12, %c0_13], %119 {strides = array<i32>} : memref<3x8x128xf32, #tpu.memory_space<vmem>>, vector<1x8x128xf32>,
    return
  }
  func.func @transform_0(%arg0: i32) -> i32 {
    %c0_i32 = arith.constant 0 : i32
    %c0_i32_0 = arith.constant 0 : i32
    return %c0_i32 : i32
  }
  func.func @transform_1(%arg0: i32) -> i32 {
    %c0_i32 = arith.constant 0 : i32
    %c0_i32_0 = arith.constant 0 : i32
    return %c0_i32 : i32
  }
  func.func @transform_2(%arg0: i32) -> (i32, i32) {
    %c0_i32 = arith.constant 0 : i32
    %c0_i32_0 = arith.constant 0 : i32
    return %arg0, %c0_i32 : i32, i32
  }
  func.func @transform_3(%arg0: i32) -> (i32, i32, i32) {
    %c0_i32 = arith.constant 0 : i32
    %c0_i32_0 = arith.constant 0 : i32
    %c0_i32_1 = arith.constant 0 : i32
    return %c0_i32, %arg0, %c0_i32_0 : i32, i32, i32
  }
}

</mosaic_0001>

<bundles_post_ra>
// kernel: tpu_custom_call.1
= control target key start
LH: loop header
LB: loop body
LE: loop exit
PB: predicated region body
PF: predicated region fallthrough
CT: control target
= control target key end

     0   :  { %8 = vsyncpa [#allocation5], 0  ;;  %s435_s0 = inlined_call_operand.hbm [shape: f32[24], index: 0, kind: input, shape index: {}]   ;;  %s436_s1 = inlined_call_operand.vmem [shape: f32[3], index: 1, kind: input, shape index: {}]   ;;  %s437_s2 = inlined_call_operand.hbm [shape: f32[8,128], index: 2, kind: input, shape index: {}]   ;;  %s438_s3 = inlined_call_operand.hbm [shape: f32[3,8,128], index: 3, kind: output, shape index: {}]  }
   0x1   :  { %9 = vsyncpa [#allocation6], 0 }
   0x2   :  { %10 = vsyncpa [#allocation3], 0 }
   0x3   :  { %11 = vsyncpa [#allocation4], 0  ;;  %s26_s14 = sshll.u32 %s436_s1, 4  ;;  %s216_s17 = scalar_lea.hbm %s435_s0, 16  ;;  %s27_s14 = int_to_ptr.vmem [resolvable:$true] %s26_s14 }
   0x4   :  { %p217_p0 = scmp.ne.s32.totalorder %s435_s0, %s216_s17  ;;  %p220_p1 = scmp.lt.u32.totalorder %s216_s17, %s435_s0 }
   0x6   :  { %p222_p2 = pnand %p220_p1, %p217_p0 }
   0x8   :  { %225 = shalt.err (!%p222_p2)
}
   0x9   :  { %s290_s22 = smov [#allocation2]   ;;  %s226_s1 = scalar_lea.vmem %s27_s14, 16 }
   0xa   :  { %19 = dma.hbm_to_smem %s435_s0, 16, %s290_s22, [#allocation5]  }
   0xb   :  { %p227_p3 = scmp.ne.s32.totalorder %s27_s14, %s226_s1  ;;  %p231_p4 = scmp.lt.s32.totalorder %s27_s14, %s27_s14 }
   0xc   :  { %p232_p5 = scmp.lt.s32.totalorder %s226_s1, %s226_s1 }
   0xe   :  { %p233_p6 = por %p232_p5, %p231_p4 }
  0x10   :  { %p234_p7 = pnand %p233_p6, %p227_p3 }
  0x12   :  { %237 = shalt.err (!%p234_p7)
}
  0x13   :  { %s291_s25 = smov [#allocation7]   ;;  %s292_s26 = smov [#allocation8]  }
  0x14   :  { %29 = dma.vmem_to_smem %s27_s14, 16, %s291_s25, [#allocation6]  }
  0x15   :  { %s36_s27 = sshll.u32 %s292_s26, 4  ;;  %s238_s30 = scalar_lea.hbm %s437_s2, 128  ;;  %s37_s27 = int_to_ptr.vmem [resolvable:$true] %s36_s27 }
  0x16   :  { %p239_p8 = scmp.ne.s32.totalorder %s437_s2, %s238_s30  ;;  %p242_p9 = scmp.lt.u32.totalorder %s238_s30, %s437_s2 }
  0x18   :  { %p244_p10 = pnand %p242_p9, %p239_p8 }
  0x1a   :  { %247 = shalt.err (!%p244_p10)
}
  0x1b   :  { %s248_s7 = scalar_lea.vmem %s37_s27, 128  ;;  %p253_p12 = scmp.lt.s32.totalorder %s37_s27, %s37_s27 }
  0x1c   :  { %p249_p11 = scmp.ne.s32.totalorder %s37_s27, %s248_s7  ;;  %p254_p13 = scmp.lt.s32.totalorder %s248_s7, %s248_s7 }
  0x1e   :  { %p255_p0 = por %p254_p13, %p253_p12 }
  0x20   :  { %p256_p1 = pnand %p255_p0, %p249_p11 }
  0x22   :  { %259 = shalt.err (!%p256_p1)
}
  0x23   :  { %39 = dma.hbm_to_vmem [thread:$0]  %s437_s2, 128, %s37_s27, [#allocation3]  }
  0x24   :  { %282 = dma.done.wait [#allocation5], 16  }
  0x25   :  { %283 = vsyncadd [#allocation5], 4294967280 }
  0x26   :  { %284 = dma.done.wait [#allocation6], 16  }
  0x27   :  { %285 = vsyncadd [#allocation6], 4294967280 }
  0x28   :  { %286 = dma.done.wait [#allocation3], 128  }
  0x29   :  { %287 = vsyncadd [#allocation3], 4294967168 }
  0x2a   :  { %49 = sfence }
  0x2b   :  { %v343_v0 = vld [vmem:[#allocation8] sm:$0xff]  ;;  %s184_s10 = sld [smem:[#allocation2 + $0x1]]  ;;  %s55_s11 = sld [smem:[#allocation7]] }
  0x2c   :  { %v347_v1 = vadd.f32 %v343_v0, %v343_v0  ;;  %s56_s12 = sld [smem:[#allocation2]]  ;;  %s192_s13 = sld [smem:[#allocation2 + $0x2]] }
  0x2d   :  { %s195_s14 = sld [smem:[#allocation2 + $0x3]]  ;;  %s351_s2 = sld [smem:[#allocation2 + $0x4]] }
  0x2e   :  { %v76_v2 = vmul.f32 %v347_v1, %v343_v0  ;;  %s353_s15 = sld [smem:[#allocation2 + $0x5]]  ;;  %s355_s16 = sld [smem:[#allocation2 + $0x6]] }
  0x2f   :  { %s185_s17 = sld [smem:[#allocation2 + $0x9]]  ;;  %s359_s19 = sld [smem:[#allocation2 + $0x8]] }
  0x30   :  { %v191_v3 = vadd.f32 -1.0, %v76_v2  ;;  %s357_s18 = sld [smem:[#allocation7 + $0x1]]  ;;  %s361_s20 = sld [smem:[#allocation2 + $0xa]] }
  0x31   :  { %v53_v4 = vstv %s184_s10  ;;  %s363_s21 = sld [smem:[#allocation2 + $0xb]]  ;;  %s367_s23 = sld [smem:[#allocation2 + $0xc]] }
  0x32   :  { %v54_v5 = vmul.f32 %v53_v4, %v343_v0  ;;  %s57_s22 = sadd.f32 %s56_s12, %s55_s11  ;;  %v79_v6 = vstv %s192_s13  ;;  %v90_v7 = vmul.f32 %v191_v3, %v347_v1  ;;  %s369_s24 = sld [smem:[#allocation2 + $0xd]] }
  0x33   :  { %v80_v8 = vmul.f32 %v191_v3, %v79_v6  ;;  %v93_v9 = vstv %s195_s14  ;;  %s371_s1 = sld [smem:[#allocation2 + $0xe]]  ;;  %s374_s25 = sld [smem:[#allocation2 + $0x11]]  ;;  %v107_v18 = vstv %s351_s2 }
  0x34   :  { %v58_v10 = vstv %s57_s22  ;;  %v91_v11 = vsub.f32 %v90_v7, %v343_v0  ;;  %s376_s26 = sld [smem:[#allocation7 + $0x2]]  ;;  %s378_s27 = sld [smem:[#allocation2 + $0x10]]  ;;  %v121_v22 = vstv %s353_s15  ;;  %v135_v31 = vstv %s355_s16 }
  0x35   :  { %v59_v12 = vadd.f32 %v58_v10, %v54_v5  ;;  %v61_v13 = vstv %s185_s17  ;;  %s384_s29 = sld [smem:[#allocation2 + $0x12]]  ;;  %s389_s30 = sld [smem:[#allocation2 + $0x13]] }
  0x36   :  { %v94_v14 = vmul.f32 %v93_v9, %v91_v11  ;;  %v104_v15 = vmul.f32 %v91_v11, %v347_v1  ;;  %v62_v16 = vmul.f32 %v61_v13, %v343_v0  ;;  %s65_s28 = sadd.f32 %s359_s19, %s357_s18  ;;  %v83_v19 = vstv %s361_s20  ;;  %s391_s4 = sld [smem:[#allocation2 + $0x14]] }
  0x37   :  { %v81_v17 = vadd.f32 %v80_v8, %v59_v12  ;;  %v97_v20 = vstv %s363_s21  ;;  %v84_v24 = vmul.f32 %v191_v3, %v83_v19  ;;  %s394_s5 = sld [smem:[#allocation2 + $0x15]]  ;;  %v111_v28 = vstv %s367_s23  ;;  %s397_s0 = sld [smem:[#allocation2 + $0x16]] }
  0x38   :  { %v105_v21 = vsub.f32 %v104_v15, %v191_v3  ;;  %v66_v23 = vstv %s65_s28  ;;  %v98_v27 = vmul.f32 %v97_v20, %v91_v11  ;;  %s401_s6 = sld [smem:[#allocation2 + $0x7]]  ;;  %v125_v32 = vstv %s369_s24  ;;  %s293_s10 = smov [#allocation9]  }
  0x39   :  { %v95_v25 = vadd.f32 %v94_v14, %v81_v17  ;;  %v67_v26 = vadd.f32 %v66_v23, %v62_v16  ;;  %s404_s7 = sld [smem:[#allocation2 + $0xf]]  ;;  %v139_v35 = vstv %s371_s1  ;;  %v69_v36 = vstv %s374_s25  ;;  %s170_s11 = sshll.u32 %s293_s10, 4  ;;  %s171_s11 = int_to_ptr.vmem [resolvable:$true] %s170_s11 }
  0x3a   :  { %v108_v29 = vmul.f32 %v107_v18, %v105_v21  ;;  %v118_v30 = vmul.f32 %v105_v21, %v347_v1  ;;  %v112_v34 = vmul.f32 %v111_v28, %v105_v21  ;;  %s73_s8 = sadd.f32 %s378_s27, %s376_s26  ;;  %s410_s9 = sld [smem:[#allocation2 + $0x17]]  ;;  %v70_v39 = vmul.f32 %v69_v36, %v343_v0 }
  0x3b   :  { %v85_v33 = vadd.f32 %v84_v24, %v67_v26  ;;  %v87_v40 = vstv %s384_s29  ;;  %v101_v44 = vstv %s389_s30  ;;  %s260_s12 = scalar_lea.vmem %s171_s11, 384  ;;  %p265_p3 = scmp.lt.s32.totalorder %s171_s11, %s171_s11 }
  0x3c   :  { %v109_v37 = vadd.f32 %v108_v29, %v95_v25  ;;  %v119_v38 = vsub.f32 %v118_v30, %v91_v11  ;;  %v74_v42 = vstv %s73_s8  ;;  %v88_v43 = vmul.f32 %v191_v3, %v87_v40  ;;  %p261_p2 = scmp.ne.s32.totalorder %s171_s11, %s260_s12  ;;  %p266_p4 = scmp.lt.s32.totalorder %s260_s12, %s260_s12 }
  0x3d   :  { %v99_v41 = vadd.f32 %v98_v27, %v85_v33  ;;  %v75_v48 = vadd.f32 %v74_v42, %v70_v39  ;;  %v102_v50 = vmul.f32 %v101_v44, %v91_v11  ;;  %v115_v51 = vstv %s391_s4 }
  0x3e   :  { %v122_v45 = vmul.f32 %v121_v22, %v119_v38  ;;  %v132_v46 = vmul.f32 %v119_v38, %v347_v1  ;;  %v126_v47 = vmul.f32 %v125_v32, %v119_v38  ;;  %v129_v52 = vstv %s394_s5  ;;  %p267_p5 = por %p266_p4, %p265_p3 }
  0x3f   :  { %v113_v49 = vadd.f32 %v112_v34, %v99_v41  ;;  %v89_v55 = vadd.f32 %v88_v43, %v75_v48  ;;  %v116_v56 = vmul.f32 %v115_v51, %v105_v21  ;;  %v130_v58 = vmul.f32 %v129_v52, %v119_v38 }
  0x40   :  { %v123_v53 = vadd.f32 %v122_v45, %v109_v37  ;;  %v133_v54 = vsub.f32 %v132_v46, %v105_v21  ;;  %v143_v59 = vstv %s397_s0  ;;  %v149_v0 = vstv %s401_s6  ;;  %p268_p6 = pnand %p267_p5, %p261_p2 }
  0x41   :  { %v127_v57 = vadd.f32 %v126_v47, %v113_v49  ;;  %v103_v63 = vadd.f32 %v102_v50, %v89_v55  ;;  %v153_v2 = vstv %s404_s7  ;;  %v157_v4 = vstv %s410_s9 }
  0x42   :  { %v136_v60 = vmul.f32 %v135_v31, %v133_v54  ;;  %v146_v61 = vmul.f32 %v133_v54, %v347_v1  ;;  %v140_v62 = vmul.f32 %v139_v35, %v133_v54  ;;  %v144_v3 = vmul.f32 %v143_v59, %v133_v54 }
  0x43   :  { %v117_v8 = vadd.f32 %v116_v56, %v103_v63 }
  0x44   :  { %v137_v5 = vadd.f32 %v136_v60, %v123_v53  ;;  %v147_v6 = vsub.f32 %v146_v61, %v119_v38  ;;  %v141_v7 = vadd.f32 %v140_v62, %v127_v57 }
  0x45   :  { %v131_v11 = vadd.f32 %v130_v58, %v117_v8 }
  0x46   :  { %v150_v9 = vmul.f32 %v149_v0, %v147_v6  ;;  %v154_v10 = vmul.f32 %v153_v2, %v147_v6  ;;  %v158_v12 = vmul.f32 %v157_v4, %v147_v6 }
  0x47   :  { %v145_v15 = vadd.f32 %v144_v3, %v131_v11 }
  0x48   :  { %v151_v13 = vadd.f32 %v150_v9, %v137_v5  ;;  %v155_v14 = vadd.f32 %v154_v10, %v141_v7 }
  0x49   :  { %v159_v1 = vadd.f32 %v158_v12, %v145_v15 }
  0x4a   :  { %160 = vst [vmem:[#allocation9] sm:$0xff] %v151_v13  ;;  %162 = vst [vmem:[#allocation9 + $0x8] sm:$0xff] %v155_v14 }
  0x4b   :  { %164 = vst [vmem:[#allocation9 + $0x10] sm:$0xff] %v159_v1 }
  0x4c   :  { %271 = shalt.err (!%p268_p6)
}
  0x4d   :  { %s272_s2 = scalar_lea.hbm %s438_s3, 384 }
  0x4e   :  { %p273_p7 = scmp.ne.s32.totalorder %s438_s3, %s272_s2  ;;  %p276_p8 = scmp.lt.u32.totalorder %s272_s2, %s438_s3 }
  0x50   :  { %p278_p9 = pnand %p276_p8, %p273_p7 }
  0x52   :  { %281 = shalt.err (!%p278_p9)
}
  0x53   :  { %s294_s19 = smov 128   ;;  %s295_s20 = smov 8  }
  0x54   :  { %176 = dma.vmem_to_hbm [thread:$0]  %s171_s11, 384, %s438_s3, [#allocation4], %s294_s19, %s294_s19, %s295_s20  }
  0x55   :  { %288 = dma.done.wait [#allocation4], 384  }
  0x56   :  { %289 = vsyncadd [#allocation4], 4294966912 }
  0x57   :  { %180 = vsyncpa [#allocation3], 1 }
  0x58   :  { %181 = vsyncpa [#allocation4], 1 }
  0x59   :  { %182 = vsyncpa [#allocation5], 1 }
  0x5a   :  { %183 = vsyncpa [#allocation6], 1 }

</bundles_post_ra>
